<compile_context>
chip_gen: v7x
topology: tpu7x:2x2x1
jax: 0.10.0
libtpu: 0.0.40
codegen_flags: <defaults>
</compile_context>

<pallas_src>
import jax
import jax.numpy as jnp
from jax.experimental import pallas as pl
from jax.experimental.pallas import tpu as pltpu


def _round_up(n, m):
    return ((n + m - 1) // m) * m


def _mlp_kernel(x_ref,
                w1_ref, b1_ref,
                w2_ref, b2_ref,
                w3_ref, b3_ref,
                w4t_ref, b4_ref,
                o_ref):
    x = x_ref[...]

    # l1 + ReLU (MXU, f32 accumulation; bias/ReLU in f32)
    h = jnp.dot(x, w1_ref[...], preferred_element_type=jnp.float32) + b1_ref[...]
    h = jnp.maximum(h, 0.0)

    # l2 + ReLU (cast the dot lhs to the streamed weight dtype; no-op for f32)
    h = jnp.dot(h.astype(w2_ref.dtype), w2_ref[...],
                preferred_element_type=jnp.float32) + b2_ref[...]
    h = jnp.maximum(h, 0.0)

    # l3 + ReLU
    h = jnp.dot(h.astype(w3_ref.dtype), w3_ref[...],
                preferred_element_type=jnp.float32) + b3_ref[...]
    h = jnp.maximum(h, 0.0)

    # l4 (out_features=1, no activation): VPU multiply + cross-lane reduce
    # instead of a 1-column MXU matmul.  w4t is the lane-major (1, s3) row.
    w4_row = w4t_ref[...].astype(jnp.float32)                # (1, s3)
    out = jnp.sum(h * w4_row, axis=-1, keepdims=True) + b4_ref[...]
    o_ref[...] = out.astype(o_ref.dtype)


def mlp_forward(x, params, *, tile_b=1024, compute_dtype=None):
    """Run the fused, batch-tiled MLP kernel.

    x: (B, input_size) float32
    params: dict with w1..w4 of shape (in, out) and b1..b4 of shape (1, out)
    tile_b: rows of x per grid step (large tiles amortize per-step overhead)
    compute_dtype: if set (e.g. jnp.bfloat16), x and the weights are streamed
      in that dtype; accumulation and elementwise work remain f32.
    returns: (B, 1) float32
    """
    B, D = x.shape

    if compute_dtype is not None:
        x = x.astype(compute_dtype)
        w = {k: params[k].astype(compute_dtype) for k in ("w1", "w2", "w3", "w4")}
    else:
        w = {k: params[k] for k in ("w1", "w2", "w3", "w4")}
    b = {k: params[k].astype(jnp.float32) for k in ("b1", "b2", "b3", "b4")}

    # Final layer weight as a lane-major (1, s3) row for the VPU reduce.
    w4t = w["w4"].reshape(1, -1)

    # Effective tile: big for real batches, collapsed for tiny ones; always a
    # multiple of 8 (sublane constraint).  Pad B up to a tile multiple.
    eff_tile = _round_up(min(tile_b, _round_up(B, 8)), 8)
    b_pad = _round_up(B, eff_tile)
    if b_pad != B:
        x = jnp.pad(x, ((0, b_pad - B), (0, 0)))
    grid = (pl.cdiv(b_pad, eff_tile),)

    def resident(a):
        # Full-extent block, constant index map -> DMA'd once, stays in VMEM.
        return pl.BlockSpec(a.shape, lambda i: (0,) * a.ndim)

    args = (x,
            w["w1"], b["b1"],
            w["w2"], b["b2"],
            w["w3"], b["b3"],
            w4t, b["b4"])

    in_specs = [pl.BlockSpec((eff_tile, D), lambda i: (i, 0))]
    in_specs += [resident(a) for a in args[1:]]

    out = pl.pallas_call(
        _mlp_kernel,
        out_shape=jax.ShapeDtypeStruct((b_pad, 1), jnp.float32),
        grid=grid,
        in_specs=in_specs,
        out_specs=pl.BlockSpec((eff_tile, 1), lambda i: (i, 0)),
        compiler_params=pltpu.CompilerParams(
            dimension_semantics=("parallel",)),
    )(*args)

    return out[:B]


def init_params(key, input_size):
    """Deterministic init matching torch.nn.Linear shapes.

    Torch Linear(in, out) has weight (out, in), bias (out,), initialized
    U(-1/sqrt(in), 1/sqrt(in)).  We store weights transposed as (in, out)
    and biases as (1, out) for the kernel.
    """
    s1 = int(2 * input_size)
    s2 = int(input_size)
    s3 = int(input_size)
    dims = [(input_size, s1), (s1, s2), (s2, s3), (s3, 1)]

    params = {}
    keys = jax.random.split(key, 2 * len(dims))
    for i, (din, dout) in enumerate(dims):
        bound = 1.0 / (din ** 0.5)
        w = jax.random.uniform(keys[2 * i], (din, dout), jnp.float32,
                               minval=-bound, maxval=bound)
        bb = jax.random.uniform(keys[2 * i + 1], (1, dout), jnp.float32,
                                minval=-bound, maxval=bound)
        params[f"w{i+1}"] = w
        params[f"b{i+1}"] = bb
    return params


def mlp_reference(x, params):
    h = jnp.maximum(x @ params["w1"] + params["b1"], 0.0)
    h = jnp.maximum(h @ params["w2"] + params["b2"], 0.0)
    h = jnp.maximum(h @ params["w3"] + params["b3"], 0.0)
    return h @ params["w4"] + params["b4"]


if __name__ == "__main__":
    key = jax.random.PRNGKey(0)
    k_param, k_x1, k_x2 = jax.random.split(key, 3)

    input_size = 32
    params = init_params(k_param, input_size)

    # 1) Small batch (B=8): tile collapses to 8 rows, single grid step.
    x_small = jax.random.normal(k_x1, (8, input_size), jnp.float32)
    out_small = jax.block_until_ready(mlp_forward(x_small, params))
    ref_small = mlp_reference(x_small, params)
    assert out_small.shape == (8, 1), out_small.shape
    assert jnp.allclose(out_small, ref_small, atol=1e-4, rtol=1e-4), \
        "f32 small-batch mismatch vs reference"

    # 2) Ragged batch + multi-step grid (B=300 padded to 384, tile_b=128).
    x_big = jax.random.normal(k_x2, (300, input_size), jnp.float32)
    out_big = jax.block_until_ready(mlp_forward(x_big, params, tile_b=128))
    ref_big = mlp_reference(x_big, params)
    assert out_big.shape == (300, 1), out_big.shape
    assert jnp.allclose(out_big, ref_big, atol=1e-4, rtol=1e-4), \
        "f32 tiled/padded mismatch vs reference"

    # 3) bf16-streamed variant (f32 accumulation) -- looser tolerance vs f32 ref.
    out_bf16 = jax.block_until_ready(
        mlp_forward(x_big, params, tile_b=128, compute_dtype=jnp.bfloat16))
    assert out_bf16.shape == (300, 1), out_bf16.shape
    assert jnp.allclose(out_bf16, ref_big, atol=1e-1, rtol=1e-1), \
        "bf16 mismatch vs f32 reference"

    print("KERNEL_OK")
</pallas_src>

<mosaic_0001>
module attributes {stable_mosaic.version = 11 : i64} {
  func.func @_mlp_kernel(%arg0: i32, %arg1: memref<8x32xf32, #tpu.memory_space<vmem>>, %arg2: memref<32x64xf32, #tpu.memory_space<vmem>>, %arg3: memref<1x64xf32, #tpu.memory_space<vmem>>, %arg4: memref<64x32xf32, #tpu.memory_space<vmem>>, %arg5: memref<1x32xf32, #tpu.memory_space<vmem>>, %arg6: memref<32x32xf32, #tpu.memory_space<vmem>>, %arg7: memref<1x32xf32, #tpu.memory_space<vmem>>, %arg8: memref<1x32xf32, #tpu.memory_space<vmem>>, %arg9: memref<1x1xf32, #tpu.memory_space<vmem>>, %arg10: memref<8x1xf32, #tpu.memory_space<vmem>>) attributes {dimension_semantics = [#tpu.dimension_semantics<parallel>], iteration_bounds = array<i64: 1>, scalar_prefetch = 0 : i64, scratch_operands = 0 : i64, tpu.core_type = #tpu.core_type<tc>, window_params = [{transform_indices = @transform_0, window_bounds = array<i64: 8, 32>}, {pipeline_mode = #tpu.pipeline_mode<synchronous>, transform_indices = @transform_1, window_bounds = array<i64: 32, 64>}, {pipeline_mode = #tpu.pipeline_mode<synchronous>, transform_indices = @transform_2, window_bounds = array<i64: 1, 64>}, {pipeline_mode = #tpu.pipeline_mode<synchronous>, transform_indices = @transform_3, window_bounds = array<i64: 64, 32>}, {pipeline_mode = #tpu.pipeline_mode<synchronous>, transform_indices = @transform_4, window_bounds = array<i64: 1, 32>}, {pipeline_mode = #tpu.pipeline_mode<synchronous>, transform_indices = @transform_5, window_bounds = array<i64: 32, 32>}, {pipeline_mode = #tpu.pipeline_mode<synchronous>, transform_indices = @transform_6, window_bounds = array<i64: 1, 32>}, {pipeline_mode = #tpu.pipeline_mode<synchronous>, transform_indices = @transform_7, window_bounds = array<i64: 1, 32>}, {pipeline_mode = #tpu.pipeline_mode<synchronous>, transform_indices = @transform_8, window_bounds = array<i64: 1, 1>}, {transform_indices = @transform_9, window_bounds = array<i64: 8, 1>}]} {
    %c0 = arith.constant 0 : index
    %c0_0 = arith.constant 0 : index
    %0 = vector.load %arg1[%c0, %c0_0] : memref<8x32xf32, #tpu.memory_space<vmem>>, vector<8x32xf32>
    %c0_1 = arith.constant 0 : index
    %c0_2 = arith.constant 0 : index
    %1 = vector.load %arg2[%c0_1, %c0_2] : memref<32x64xf32, #tpu.memory_space<vmem>>, vector<32x64xf32>
    %cst = arith.constant dense<0.000000e+00> : vector<8x64xf32>
    %2 = tpu.matmul %0, %1, %cst {dimension_numbers = #tpu.dot_dimension_numbers<[1], [0], [0], [1], [0, 0, 1, 1], [], []>} : vector<8x32xf32>, vector<32x64xf32>, vector<8x64xf32> -> vector<8x64xf32>
    %c0_3 = arith.constant 0 : index
    %c0_4 = arith.constant 0 : index
    %3 = vector.load %arg3[%c0_3, %c0_4] : memref<1x64xf32, #tpu.memory_space<vmem>>, vector<1x64xf32>
    %4 = vector.broadcast %3 : vector<1x64xf32> to vector<8x64xf32>
    %5 = arith.addf %2, %4 : vector<8x64xf32>
    %cst_5 = arith.constant 0.000000e+00 : f32
    %6 = vector.broadcast %cst_5 : f32 to vector<8x64xf32>
    %7 = arith.maximumf %5, %6 : vector<8x64xf32>
    %c0_6 = arith.constant 0 : index
    %c0_7 = arith.constant 0 : index
    %8 = vector.load %arg4[%c0_6, %c0_7] : memref<64x32xf32, #tpu.memory_space<vmem>>, vector<64x32xf32>
    %cst_8 = arith.constant dense<0.000000e+00> : vector<8x32xf32>
    %9 = tpu.matmul %7, %8, %cst_8 {dimension_numbers = #tpu.dot_dimension_numbers<[1], [0], [0], [1], [0, 0, 1, 1], [], []>} : vector<8x64xf32>, vector<64x32xf32>, vector<8x32xf32> -> vector<8x32xf32>
    %c0_9 = arith.constant 0 : index
    %c0_10 = arith.constant 0 : index
    %10 = vector.load %arg5[%c0_9, %c0_10] : memref<1x32xf32, #tpu.memory_space<vmem>>, vector<1x32xf32>
    %11 = vector.broadcast %10 : vector<1x32xf32> to vector<8x32xf32>
    %12 = arith.addf %9, %11 : vector<8x32xf32>
    %cst_11 = arith.constant 0.000000e+00 : f32
    %13 = vector.broadcast %cst_11 : f32 to vector<8x32xf32>
    %14 = arith.maximumf %12, %13 : vector<8x32xf32>
    %c0_12 = arith.constant 0 : index
    %c0_13 = arith.constant 0 : index
    %15 = vector.load %arg6[%c0_12, %c0_13] : memref<32x32xf32, #tpu.memory_space<vmem>>, vector<32x32xf32>
    %cst_14 = arith.constant dense<0.000000e+00> : vector<8x32xf32>
    %16 = tpu.matmul %14, %15, %cst_14 {dimension_numbers = #tpu.dot_dimension_numbers<[1], [0], [0], [1], [0, 0, 1, 1], [], []>} : vector<8x32xf32>, vector<32x32xf32>, vector<8x32xf32> -> vector<8x32xf32>
    %c0_15 = arith.constant 0 : index
    %c0_16 = arith.constant 0 : index
    %17 = vector.load %arg7[%c0_15, %c0_16] : memref<1x32xf32, #tpu.memory_space<vmem>>, vector<1x32xf32>
    %18 = vector.broadcast %17 : vector<1x32xf32> to vector<8x32xf32>
    %19 = arith.addf %16, %18 : vector<8x32xf32>
    %cst_17 = arith.constant 0.000000e+00 : f32
    %20 = vector.broadcast %cst_17 : f32 to vector<8x32xf32>
    %21 = arith.maximumf %19, %20 : vector<8x32xf32>
    %c0_18 = arith.constant 0 : index
    %c0_19 = arith.constant 0 : index
    %22 = vector.load %arg8[%c0_18, %c0_19] : memref<1x32xf32, #tpu.memory_space<vmem>>, vector<1x32xf32>
    %23 = vector.broadcast %22 : vector<1x32xf32> to vector<8x32xf32>
    %24 = arith.mulf %21, %23 : vector<8x32xf32>
    %cst_20 = arith.constant dense<0.000000e+00> : vector<8xf32>
    %25 = vector.multi_reduction <add>, %24, %cst_20 [1] : vector<8x32xf32> to vector<8xf32>
    %26 = vector.shape_cast %25 : vector<8xf32> to vector<8x1xf32>
    %c0_21 = arith.constant 0 : index
    %c0_22 = arith.constant 0 : index
    %27 = vector.load %arg9[%c0_21, %c0_22] : memref<1x1xf32, #tpu.memory_space<vmem>>, vector<1x1xf32>
    %28 = vector.broadcast %27 : vector<1x1xf32> to vector<8x1xf32>
    %29 = arith.addf %26, %28 : vector<8x1xf32>
    %c0_23 = arith.constant 0 : index
    %c0_24 = arith.constant 0 : index
    %30 = vector.load %arg10[%c0_23, %c0_24] : memref<8x1xf32, #tpu.memory_space<vmem>>, vector<8x1xf32>
    tpu.vector_store %arg10[%c0_23, %c0_24], %29 {strides = array<i32>} : memref<8x1xf32, #tpu.memory_space<vmem>>, vector<8x1xf32>,
    return
  }
  func.func @transform_0(%arg0: i32) -> (i32, i32) {
    %c0_i32 = arith.constant 0 : i32
    %c0_i32_0 = arith.constant 0 : i32
    return %arg0, %c0_i32 : i32, i32
  }
  func.func @transform_1(%arg0: i32) -> (i32, i32) {
    %c0_i32 = arith.constant 0 : i32
    %c0_i32_0 = arith.constant 0 : i32
    %c0_i32_1 = arith.constant 0 : i32
    return %c0_i32, %c0_i32_0 : i32, i32
  }
  func.func @transform_2(%arg0: i32) -> (i32, i32) {
    %c0_i32 = arith.constant 0 : i32
    %c0_i32_0 = arith.constant 0 : i32
    %c0_i32_1 = arith.constant 0 : i32
    return %c0_i32, %c0_i32_0 : i32, i32
  }
  func.func @transform_3(%arg0: i32) -> (i32, i32) {
    %c0_i32 = arith.constant 0 : i32
    %c0_i32_0 = arith.constant 0 : i32
    %c0_i32_1 = arith.constant 0 : i32
    return %c0_i32, %c0_i32_0 : i32, i32
  }
  func.func @transform_4(%arg0: i32) -> (i32, i32) {
    %c0_i32 = arith.constant 0 : i32
    %c0_i32_0 = arith.constant 0 : i32
    %c0_i32_1 = arith.constant 0 : i32
    return %c0_i32, %c0_i32_0 : i32, i32
  }
  func.func @transform_5(%arg0: i32) -> (i32, i32) {
    %c0_i32 = arith.constant 0 : i32
    %c0_i32_0 = arith.constant 0 : i32
    %c0_i32_1 = arith.constant 0 : i32
    return %c0_i32, %c0_i32_0 : i32, i32
  }
  func.func @transform_6(%arg0: i32) -> (i32, i32) {
    %c0_i32 = arith.constant 0 : i32
    %c0_i32_0 = arith.constant 0 : i32
    %c0_i32_1 = arith.constant 0 : i32
    return %c0_i32, %c0_i32_0 : i32, i32
  }
  func.func @transform_7(%arg0: i32) -> (i32, i32) {
    %c0_i32 = arith.constant 0 : i32
    %c0_i32_0 = arith.constant 0 : i32
    %c0_i32_1 = arith.constant 0 : i32
    return %c0_i32, %c0_i32_0 : i32, i32
  }
  func.func @transform_8(%arg0: i32) -> (i32, i32) {
    %c0_i32 = arith.constant 0 : i32
    %c0_i32_0 = arith.constant 0 : i32
    %c0_i32_1 = arith.constant 0 : i32
    return %c0_i32, %c0_i32_0 : i32, i32
  }
  func.func @transform_9(%arg0: i32) -> (i32, i32) {
    %c0_i32 = arith.constant 0 : i32
    %c0_i32_0 = arith.constant 0 : i32
    return %arg0, %c0_i32 : i32, i32
  }
}

</mosaic_0001>

<bundles_post_ra>
// kernel: tpu_custom_call.1
= control target key start
LH: loop header
LB: loop body
LE: loop exit
PB: predicated region body
PF: predicated region fallthrough
CT: control target
= control target key end

     0   :  { %v416_v0 = vmov 0.0|0.0   ;;  %vm417_vm0 = vmmov 0   ;;  %v418_v4 = vmov 0.0   ;;  %vm46_vm1 = vcmask 261120   ;;  %s544_s1 = inlined_call_operand.vmem [shape: f32[32,64], index: 1, kind: input, shape index: {}]   ;;  %s545_s3 = inlined_call_operand.vmem [shape: f32[64,32], index: 3, kind: input, shape index: {}]   ;;  %s546_s0 = inlined_call_operand.vmem [shape: f32[8,32], index: 0, kind: input, shape index: {}]   ;;  %s547_s5 = inlined_call_operand.vmem [shape: f32[32,32], index: 5, kind: input, shape index: {}]   ;;  %s548_s2 = inlined_call_operand.vmem [shape: f32[1,64], index: 2, kind: input, shape index: {}]   ;;  %s549_s4 = inlined_call_operand.vmem [shape: f32[1,32], index: 4, kind: input, shape index: {}]   ;;  %s550_s8 = inlined_call_operand.<no memory space> [shape: f32[1,1], index: 8, kind: input, shape index: {}]   ;;  %s551_s6 = inlined_call_operand.vmem [shape: f32[1,32], index: 6, kind: input, shape index: {}]   ;;  %s552_s7 = inlined_call_operand.vmem [shape: f32[1,32], index: 7, kind: input, shape index: {}]   ;;  %s553_s9 = inlined_call_operand.vmem [shape: f32[8,1], index: 9, kind: output, shape index: {}]  }
   0x1   :  { %389 = vmatprep.subr.bf16.mxu0 %v416_v0  ;;  %v35_v1 = vld [vmem:[%s544_s1] sm:$0xff]  ;;  %v36_v2 = vld [vmem:[%s544_s1 + $0x8] sm:$0xff]  ;;  %v37_v3 = vld [vmem:[%s544_s1 + $0x10] sm:$0xff]  ;;  %356 = vmatprep.mubr.msk.f32.mxu0 %vm417_vm0, %v418_v4  ;;  %vm136_vm2 = vcmask 523264   ;;  %v14_v37 = vstv %s550_s8  ;;  %vm315_vm3 = vcmask 7168  }
   0x2   :  { %v390_v5 = vpack.c.bf16 %v36_v2, %v35_v1  ;;  %v38_v6 = vld [vmem:[%s544_s1 + $0x18] sm:$0xff]  ;;  %395 = vmatprep.subr.bf16.mxu1 %v416_v0  ;;  %v121_v7 = vld [vmem:[%s545_s3] sm:$0xff]  ;;  %375 = vmatprep.mubr.msk.f32.mxu1 %vm417_vm0, %v418_v4  ;;  %v122_v8 = vld [vmem:[%s545_s3 + $0x8] sm:$0xff]  ;;  %15 = vst [vmem:[#allocation2] sm:$0x1] %v14_v37 }
   0x3   :  { %v123_v9 = vld [vmem:[%s545_s3 + $0x10] sm:$0xff]  ;;  %v124_v10 = vld [vmem:[%s545_s3 + $0x18] sm:$0xff]  ;;  %v393_v11 = vpack.c.bf16 %v38_v6, %v37_v3  ;;  %v396_v12 = vpack.c.bf16 %v122_v8, %v121_v7  ;;  %v125_v14 = vld [vmem:[%s545_s3 + $0x20] sm:$0xff] }
   0x4   :  { %391 = vmatpush3.bf16.msra.mxu0 %v390_v5  ;;  %v399_v13 = vpack.c.bf16 %v124_v10, %v123_v9  ;;  %v126_v15 = vld [vmem:[%s545_s3 + $0x28] sm:$0xff]  ;;  %v34_v16 = vld [vmem:[%s546_s0] sm:$0xff]  ;;  %v127_v18 = vld [vmem:[%s545_s3 + $0x30] sm:$0xff] }
   0x5   :  { %392 = vmatprep.subr.bf16.mxu0 %v416_v0  ;;  %397 = vmatpush3.bf16.msra.mxu1 %v396_v12  ;;  %v402_v17 = vpack.c.bf16 %v126_v15, %v125_v14  ;;  %v128_v19 = vld [vmem:[%s545_s3 + $0x38] sm:$0xff]  ;;  %v211_v21 = vld [vmem:[%s547_s5] sm:$0xff]  ;;  %v212_v22 = vld [vmem:[%s547_s5 + $0x8] sm:$0xff] }
   0x6   :  { %398 = vmatprep.subr.bf16.mxu1 %v416_v0  ;;  %v405_v20 = vpack.c.bf16 %v128_v19, %v127_v18  ;;  %v408_v23 = vpack.c.bf16 %v212_v22, %v211_v21  ;;  %v321_v24 = vld [vmem:[%s548_s2] ss:$0 sm:$0xff]  ;;  %v213_v29 = vld [vmem:[%s547_s5 + $0x10] sm:$0xff]  ;;  %v214_v30 = vld [vmem:[%s547_s5 + $0x18] sm:$0xff] }
   0x7   :  { %v411_v31 = vpack.c.bf16 %v214_v30, %v213_v29  ;;  %v323_v32 = vld [vmem:[%s549_s4] ss:$0 sm:$0xff] }
   0x8   :  { %394 = vmatpush3.bf16.msra.mxu0 %v393_v11  ;;  %v325_v38 = vld [vmem:[%s551_s6] ss:$0 sm:$0xff] }
   0x9   :  { %407 = vmatprep.subr.bf16.mxu0 %v416_v0  ;;  %400 = vmatpush3.bf16.msra.mxu1 %v399_v13  ;;  %v327_v42 = vld [vmem:[%s552_s7] ss:$0 sm:$0xff] }
   0xa   :  { %401 = vmatprep.subr.bf16.mxu1 %v416_v0  ;;  %v328_v46 = vld [vmem:[#allocation2] ss:$0 sm:$0xff] }
   0xb   :  { %357 = vmatmul.mubr.msk.f32.vlgmr.msra.gmra.mrb[0].mxu0 %vm46_vm1, %v34_v16 }
   0xc   :  { %386 = vmatprep.mubr.msk.f32.mxu0 %vm417_vm0, %v418_v4  ;;  %409 = vmatpush3.bf16.msra.mxu0 %v408_v23 }
   0xd   :  { %403 = vmatpush3.bf16.msra.mxu1 %v402_v17  ;;  %410 = vmatprep.subr.bf16.mxu0 %v416_v0 }
   0xe   :  { %404 = vmatprep.subr.bf16.mxu1 %v416_v0 }
  0x10   :  { %412 = vmatpush3.bf16.msra.mxu0 %v411_v31 }
  0x11   :  { %406 = vmatpush3.bf16.msra.mxu1 %v405_v20 }
  0xde   :  { %v116_v25 = vpop.f32.mrb[0].mxu0 }
  0xdf   :  { %v117_v26 = vadd.f32 %v321_v24, %v116_v25  ;;  %v358_v27 = vpop.f32.mrb[1].mxu0 }
  0xe1   :  { %v120_v28 = vmax.f32 %v117_v26, 0.0 }
  0xe3   :  { %376 = vmatmul.mubr.msk.f32.vlgmr.msra.gmra.mrb[0].mxu1 %vm136_vm2, %v120_v28 }
 0x1b6   :  { %v206_v33 = vpop.f32.mrb[0].mxu1 }
 0x1b7   :  { %v207_v34 = vadd.f32 %v323_v32, %v206_v33  ;;  %v377_v35 = vpop.f32.mrb[1].mxu1 }
 0x1b9   :  { %v210_v36 = vmax.f32 %v207_v34, 0.0 }
 0x1bb   :  { %387 = vmatmul.mubr.msk.f32.vlgmr.msra.gmra.mrb[2].mxu0 %vm46_vm1, %v210_v36 }
 0x28e   :  { %v291_v39 = vpop.f32.mrb[2].mxu0 }
 0x28f   :  { %v292_v40 = vadd.f32 %v325_v38, %v291_v39  ;;  %v388_v41 = vpop.f32.mrb[3].mxu0 }
 0x291   :  { %v295_v43 = vmax.f32 %v292_v40, 0.0 }
 0x293   :  { %v303_v44 = vmul.f32 %v327_v42, %v295_v43 }
 0x295   :  { %v304_v45 = vsel %vm46_vm1, %v303_v44, 0.0 }
 0x296   :  { %305 = vadd.xlane.f32.xlu0 %v304_v45 }
 0x323   :  { %v306_v47 = vpop.xlane.xlu0 %305 }
 0x324   :  { %v314_v48 = vadd.f32 %v328_v46, %v306_v47 }
 0x326   :  { %316 = vst.msk [vmem:[%s553_s9] sm:$0xff] %vm315_vm3, %v314_v48 }

</bundles_post_ra>
